<compile_context>
chip_gen: v6e
topology: v6e:2x2x1
jax: 0.10.0
libtpu: 0.0.40
codegen_flags: <defaults>
</compile_context>

<pallas_src>
import jax
import jax.numpy as jnp
from jax import lax
from jax.experimental import pallas as pl
from jax.experimental.pallas import tpu as pltpu

EPS = 1e-5


def _round_up(x, m):
    return (x + m - 1) // m * m


def _vmem_limit_bytes():
    """Per-generation scoped-VMEM budget: ~48 MiB on v7x (64 MiB physical),
    64 MiB on v5e/v6e (128 MiB physical)."""
    cap = 64 * 1024 * 1024
    try:
        cap = int(pltpu.get_tpu_info().vmem_capacity_bytes)
    except Exception:
        pass
    return int(max(16 * 1024 * 1024, min(cap * 3 // 4, 64 * 1024 * 1024)))


def _pick_tile(C, N, hw, vmem_limit):
    """Pixel-tile (lane) width, chosen by bytes against the VMEM budget.

    The apply pass holds ~4 big live buffers (double-buffered x and out
    tiles), so one tile is capped at ~vmem_limit/6 with a ~8 MiB target.
    Sublane padding for C < 8 (f32) is accounted for via Cp."""
    Cp = _round_up(max(C, 8), 8)
    target_bytes = min(8 * 1024 * 1024, vmem_limit // 6)
    tile = max(128, (target_bytes // (Cp * 4)) // 128 * 128)
    hw128 = _round_up(hw, 128)
    tile = min(tile, hw128)
    # Prefer a tile that divides hw (no padding / no output slice), as long
    # as it does not shrink the tile by more than 2x.
    if hw % 128 == 0 and tile < hw:
        t = tile
        while t > 128 and hw % t != 0:
            t -= 128
        if hw % t == 0 and 2 * t >= tile:
            tile = t
    # Keep at least ~4 grid steps (>=2 per TensorCore on v7x) so the
    # double-buffered pipeline actually overlaps.
    while tile > 128 and N * ((hw + tile - 1) // tile) < 4:
        tile = max(128, (tile // 2) // 128 * 128)
    return tile


# ---------------- Pass 1: global sufficient statistics ----------------------
def stats_kernel(x_ref, shift_ref, sum_ref, gram_ref):
    """Accumulate sum(x - shift) (C,1) and Gram (x-shift)(x-shift)^T (C,C).

    Grid = (split, N, tiles_per_core): the leading axis is "parallel" (one
    accumulator slot per TensorCore on v7x); the other two are "arbitrary"
    reduction axes over which the output block stays VMEM-resident (P3).
    Padded zero columns are corrected analytically in the fold.
    """
    @pl.when((pl.program_id(1) == 0) & (pl.program_id(2) == 0))
    def _():
        sum_ref[...] = jnp.zeros_like(sum_ref)
        gram_ref[...] = jnp.zeros_like(gram_ref)

    xc = x_ref[...] - shift_ref[...]                          # (C, tile) f32
    sum_ref[0] += jnp.sum(xc, axis=1, keepdims=True)          # XLU lane reduce
    # Gram over the lane axis; pass 1 is HBM-bound so a possible operand
    # transpose in this lowering is hidden under the DMA.
    gram_ref[0] += lax.dot_general(
        xc, xc, (((1,), (1,)), ((), ())),
        preferred_element_type=jnp.float32)


# ---------------- Pass 2: fused apply ----------------------------------------
def apply_kernel(x_ref, b_ref, c_ref, o_ref):
    """out = B @ x + c : conv/BN/conv/BN/residual folded into one (C,C)
    matmul plus a per-channel shift; lane-dense unmasked store."""
    o_ref[...] = jnp.dot(b_ref[...], x_ref[...],
                         preferred_element_type=jnp.float32) + c_ref[...]


# ---------------- Fold the block into (B, c) from the global stats -----------
def _fold_params(sum_acc, gram_acc, shift, params, P, Q, C):
    """Collapse conv1->BN1->conv2->BN2 (+ residual) into out = B x + c.

    Exact identities of training-mode BN: conv biases b1/b2 and BN1's beta
    cancel; BN means/vars derive from (sum, Gram) because 1x1 convs are
    channel-linear.  `shift` is the numerical pre-shift used in pass 1 and
    Q is the number of zero-padded pixel columns (corrected analytically).
    """
    s = jnp.sum(sum_acc, axis=0)                       # (C,1) sum over core partials
    g = jnp.sum(gram_acc, axis=0)                      # (C,C)
    d = (s + Q * shift) / P                            # E_valid[x] - shift
    mu = shift + d                                     # (C,1)
    cov = (g - Q * (shift @ shift.T)) / P - d @ d.T    # biased covariance (C,C)

    w1 = params["w1"].reshape(C, C)                    # (out, in)
    w2 = params["w2"].reshape(C, C)
    var1 = jnp.sum((w1 @ cov) * w1, axis=1)            # diag(W1 cov W1^T)
    s1 = params["gamma1"] * lax.rsqrt(var1 + EPS)      # (C,)
    m = (w1.T * s1[None, :]) @ w2.T                    # W1^T D1 W2^T   (C,C)
    var2 = jnp.sum((m.T @ cov) * m.T, axis=1)          # diag(M^T cov M)
    s2 = params["gamma2"] * lax.rsqrt(var2 + EPS)      # (C,)
    a_t = (m * s2[None, :]).T                          # A = D2 W2 D1 W1
    b_eff = jnp.eye(C, dtype=jnp.float32) + a_t        # B = I + A
    c = params["beta2"].reshape(C, 1) - a_t @ mu       # (C,1)
    return b_eff, c


# ---------------- Wrapper -----------------------------------------------------
def resnet_block(x_nchw, params):
    """x_nchw: (N, C, H, W) float32. params: dict of weights (see init_params)."""
    N, C, H, W = x_nchw.shape
    hw = H * W

    # NCHW -> (N, C, H*W): free, layout-preserving (no HBM transpose).
    x3 = x_nchw.astype(jnp.float32).reshape(N, C, hw)

    # Cheap per-channel pre-shift (first <=1024 pixels of sample 0) for a
    # numerically stable covariance in pass 1.
    shift = jnp.mean(x3[0, :, : min(hw, 1024)], axis=1,
                     keepdims=True).astype(jnp.float32)        # (C, 1)

    vmem_limit = _vmem_limit_bytes()
    tile = _pick_tile(C, N, hw, vmem_limit)
    hw_pad = _round_up(hw, tile)
    if hw_pad != hw:
        x3 = jnp.pad(x3, ((0, 0), (0, 0), (0, hw_pad - hw)))
    n_tiles = hw_pad // tile

    # v7x: split the stats reduction 2-way across TensorCores when possible.
    split = 2 if (n_tiles % 2 == 0 and n_tiles >= 2) else 1
    half = n_tiles // split

    P = N * hw                      # valid pixel count
    Q = N * (hw_pad - hw)           # zero-padded pixel count

    # -------- pass 1: global sums ---------------------------------------------
    sum_acc, gram_acc = pl.pallas_call(
        stats_kernel,
        out_shape=(jax.ShapeDtypeStruct((split, C, 1), jnp.float32),
                   jax.ShapeDtypeStruct((split, C, C), jnp.float32)),
        grid=(split, N, half),
        in_specs=[pl.BlockSpec((pl.Squeezed(), C, tile),
                               lambda c, n, i: (n, 0, c * half + i)),
                  pl.BlockSpec((C, 1), lambda c, n, i: (0, 0))],
        out_specs=(pl.BlockSpec((1, C, 1), lambda c, n, i: (c, 0, 0)),
                   pl.BlockSpec((1, C, C), lambda c, n, i: (c, 0, 0))),
        compiler_params=pltpu.CompilerParams(
            dimension_semantics=("parallel", "arbitrary", "arbitrary"),
            vmem_limit_bytes=vmem_limit),
    )(x3, shift)

    # -------- fold the whole block into one (C,C) matrix + (C,1) shift -------
    b_eff, c_vec = _fold_params(sum_acc, gram_acc, shift, params, P, Q, C)

    # -------- pass 2: apply (independent tiles -> megacore) ------------------
    out3 = pl.pallas_call(
        apply_kernel,
        out_shape=jax.ShapeDtypeStruct((N, C, hw_pad), jnp.float32),
        grid=(N, n_tiles),
        in_specs=[pl.BlockSpec((pl.Squeezed(), C, tile), lambda n, i: (n, 0, i)),
                  pl.BlockSpec((C, C), lambda n, i: (0, 0)),
                  pl.BlockSpec((C, 1), lambda n, i: (0, 0))],
        out_specs=pl.BlockSpec((pl.Squeezed(), C, tile), lambda n, i: (n, 0, i)),
        compiler_params=pltpu.CompilerParams(
            dimension_semantics=("parallel", "parallel"),
            vmem_limit_bytes=vmem_limit),
    )(x3, b_eff, c_vec)

    if hw_pad != hw:
        out3 = out3[:, :, :hw]
    return out3.reshape(N, C, H, W)


def init_params(key, dim):
    """Deterministic synthetic parameters matching the module's shapes."""
    k1, k2, k3, k4, k5, k6 = jax.random.split(key, 6)
    scale = 1.0 / jnp.sqrt(dim)
    return {
        "w1": jax.random.uniform(k1, (dim, dim, 1, 1), jnp.float32, -scale, scale),
        "b1": jax.random.uniform(k2, (dim,), jnp.float32, -scale, scale),
        "gamma1": 1.0 + 0.1 * jax.random.normal(k3, (dim,), jnp.float32),
        "beta1": 0.1 * jax.random.normal(k4, (dim,), jnp.float32),
        "w2": jax.random.uniform(k5, (dim, dim, 1, 1), jnp.float32, -scale, scale),
        "b2": jax.random.uniform(k6, (dim,), jnp.float32, -scale, scale),
        "gamma2": jnp.ones((dim,), jnp.float32),
        "beta2": jnp.zeros((dim,), jnp.float32),
    }


def reference_resnet_block(x_nchw, params):
    """Pure-JAX reference (NCHW, matches PyTorch training-mode BatchNorm2d).
    Uses the biases b1/b2 and beta1 explicitly, validating that the folded
    kernel's algebraic cancellations are exact."""
    N, C, H, W = x_nchw.shape

    def conv1x1(x, w, b):
        y = jnp.einsum("nchw,oc->nohw", x, w.reshape(C, C))
        return y + b.reshape(1, C, 1, 1)

    def bn(x, gamma, beta):
        mean = jnp.mean(x, axis=(0, 2, 3), keepdims=True)
        var = jnp.mean((x - mean) ** 2, axis=(0, 2, 3), keepdims=True)
        xn = (x - mean) * lax.rsqrt(var + EPS)
        return xn * gamma.reshape(1, C, 1, 1) + beta.reshape(1, C, 1, 1)

    y = conv1x1(x_nchw, params["w1"], params["b1"])
    y = bn(y, params["gamma1"], params["beta1"])
    y = conv1x1(y, params["w2"], params["b2"])
    y = bn(y, params["gamma2"], params["beta2"])
    return x_nchw + y


if __name__ == "__main__":
    key = jax.random.PRNGKey(0)
    kx, kp = jax.random.split(key)

    N, C, H, W = 2, 4, 16, 16          # dim = 4, H*W = 256
    x = jax.random.normal(kx, (N, C, H, W), jnp.float32)
    params = init_params(kp, C)

    # With these shapes the auto-tiler picks tile=128 -> stats grid (2,2,1)
    # (exercising the split + cross-tile accumulation) and apply grid (2,2).
    out = resnet_block(x, params)
    out = jax.block_until_ready(out)

    ref = reference_resnet_block(x, params)
    assert out.shape == (N, C, H, W)
    assert jnp.allclose(out, ref, atol=1e-4, rtol=1e-4), "mismatch vs JAX reference"

    print("KERNEL_OK")
</pallas_src>

<mosaic_0001>
module attributes {stable_mosaic.version = 11 : i64} {
  func.func @stats_kernel(%arg0: i32, %arg1: i32, %arg2: i32, %arg3: memref<1x4x128xf32, #tpu.memory_space<vmem>>, %arg4: memref<4x1xf32, #tpu.memory_space<vmem>>, %arg5: memref<1x4x1xf32, #tpu.memory_space<vmem>>, %arg6: memref<1x4x4xf32, #tpu.memory_space<vmem>>) attributes {dimension_semantics = [#tpu.dimension_semantics<parallel>, #tpu.dimension_semantics<arbitrary>, #tpu.dimension_semantics<arbitrary>], iteration_bounds = array<i64: 2, 2, 1>, scalar_prefetch = 0 : i64, scratch_operands = 0 : i64, tpu.core_type = #tpu.core_type<tc>, window_params = [{transform_indices = @transform_0, window_bounds = array<i64: 1, 4, 128>}, {pipeline_mode = #tpu.pipeline_mode<synchronous>, transform_indices = @transform_1, window_bounds = array<i64: 4, 1>}, {transform_indices = @transform_2, window_bounds = array<i64: 1, 4, 1>}, {transform_indices = @transform_3, window_bounds = array<i64: 1, 4, 4>}]} {
    %c0_i32 = arith.constant 0 : i32
    %0 = arith.cmpi eq, %arg1, %c0_i32 : i32
    %c0_i32_0 = arith.constant 0 : i32
    %1 = arith.cmpi eq, %arg2, %c0_i32_0 : i32
    %2 = arith.andi %0, %1 : i1
    %3 = arith.extui %2 : i1 to i32
    %c0_i32_1 = arith.constant 0 : i32
    %4 = arith.cmpi ne, %3, %c0_i32_1 : i32
    scf.if %4 {
      %cst_19 = arith.constant 0.000000e+00 : f32
      %25 = vector.broadcast %cst_19 : f32 to vector<1x4x1xf32>
      %c0_20 = arith.constant 0 : index
      %c0_21 = arith.constant 0 : index
      %c0_22 = arith.constant 0 : index
      %26 = vector.load %arg5[%c0_20, %c0_21, %c0_22] : memref<1x4x1xf32, #tpu.memory_space<vmem>>, vector<1x4x1xf32>
      tpu.vector_store %arg5[%c0_20, %c0_21, %c0_22], %25 {strides = array<i32>} : memref<1x4x1xf32, #tpu.memory_space<vmem>>, vector<1x4x1xf32>,
      %cst_23 = arith.constant 0.000000e+00 : f32
      %27 = vector.broadcast %cst_23 : f32 to vector<1x4x4xf32>
      %c0_24 = arith.constant 0 : index
      %c0_25 = arith.constant 0 : index
      %c0_26 = arith.constant 0 : index
      %28 = vector.load %arg6[%c0_24, %c0_25, %c0_26] : memref<1x4x4xf32, #tpu.memory_space<vmem>>, vector<1x4x4xf32>
      tpu.vector_store %arg6[%c0_24, %c0_25, %c0_26], %27 {strides = array<i32>} : memref<1x4x4xf32, #tpu.memory_space<vmem>>, vector<1x4x4xf32>,
    } else {
    }
    %c0 = arith.constant 0 : index
    %c0_2 = arith.constant 0 : index
    %c0_3 = arith.constant 0 : index
    %5 = vector.load %arg3[%c0, %c0_2, %c0_3] : memref<1x4x128xf32, #tpu.memory_space<vmem>>, vector<1x4x128xf32>
    %6 = vector.shape_cast %5 : vector<1x4x128xf32> to vector<4x128xf32>
    %c0_4 = arith.constant 0 : index
    %c0_5 = arith.constant 0 : index
    %7 = vector.load %arg4[%c0_4, %c0_5] : memref<4x1xf32, #tpu.memory_space<vmem>>, vector<4x1xf32>
    %8 = vector.broadcast %7 : vector<4x1xf32> to vector<4x128xf32>
    %9 = arith.subf %6, %8 : vector<4x128xf32>
    %c0_6 = arith.constant 0 : index
    %c0_7 = arith.constant 0 : index
    %c0_8 = arith.constant 0 : index
    %10 = vector.load %arg5[%c0_6, %c0_7, %c0_8] : memref<1x4x1xf32, #tpu.memory_space<vmem>>, vector<1x4x1xf32>
    %11 = vector.shape_cast %10 : vector<1x4x1xf32> to vector<4x1xf32>
    %cst = arith.constant dense<0.000000e+00> : vector<4xf32>
    %12 = vector.multi_reduction <add>, %9, %cst [1] : vector<4x128xf32> to vector<4xf32>
    %13 = vector.shape_cast %12 : vector<4xf32> to vector<4x1xf32>
    %14 = arith.addf %11, %13 : vector<4x1xf32>
    %c0_9 = arith.constant 0 : index
    %c0_10 = arith.constant 0 : index
    %c0_11 = arith.constant 0 : index
    %15 = vector.load %arg5[%c0_9, %c0_10, %c0_11] : memref<1x4x1xf32, #tpu.memory_space<vmem>>, vector<1x4x1xf32>
    %16 = vector.shape_cast %15 : vector<1x4x1xf32> to vector<4x1xf32>
    %17 = vector.shape_cast %14 : vector<4x1xf32> to vector<1x4x1xf32>
    tpu.vector_store %arg5[%c0_9, %c0_10, %c0_11], %17 {strides = array<i32>} : memref<1x4x1xf32, #tpu.memory_space<vmem>>, vector<1x4x1xf32>,
    %c0_12 = arith.constant 0 : index
    %c0_13 = arith.constant 0 : index
    %c0_14 = arith.constant 0 : index
    %18 = vector.load %arg6[%c0_12, %c0_13, %c0_14] : memref<1x4x4xf32, #tpu.memory_space<vmem>>, vector<1x4x4xf32>
    %19 = vector.shape_cast %18 : vector<1x4x4xf32> to vector<4x4xf32>
    %cst_15 = arith.constant dense<0.000000e+00> : vector<4x4xf32>
    %20 = tpu.matmul %9, %9, %cst_15 {dimension_numbers = #tpu.dot_dimension_numbers<[1], [1], [0], [0], [0, 0, 1, 0], [], []>} : vector<4x128xf32>, vector<4x128xf32>, vector<4x4xf32> -> vector<4x4xf32>
    %21 = arith.addf %19, %20 : vector<4x4xf32>
    %c0_16 = arith.constant 0 : index
    %c0_17 = arith.constant 0 : index
    %c0_18 = arith.constant 0 : index
    %22 = vector.load %arg6[%c0_16, %c0_17, %c0_18] : memref<1x4x4xf32, #tpu.memory_space<vmem>>, vector<1x4x4xf32>
    %23 = vector.shape_cast %22 : vector<1x4x4xf32> to vector<4x4xf32>
    %24 = vector.shape_cast %21 : vector<4x4xf32> to vector<1x4x4xf32>
    tpu.vector_store %arg6[%c0_16, %c0_17, %c0_18], %24 {strides = array<i32>} : memref<1x4x4xf32, #tpu.memory_space<vmem>>, vector<1x4x4xf32>,
    return
  }
  func.func @transform_0(%arg0: i32, %arg1: i32, %arg2: i32) -> (i32, i32, i32) {
    %c1_i32 = arith.constant 1 : i32
    %0 = arith.muli %arg0, %c1_i32 : i32
    %1 = arith.addi %0, %arg2 : i32
    %c0_i32 = arith.constant 0 : i32
    %c0_i32_0 = arith.constant 0 : i32
    return %arg1, %c0_i32, %1 : i32, i32, i32
  }
  func.func @transform_1(%arg0: i32, %arg1: i32, %arg2: i32) -> (i32, i32) {
    %c0_i32 = arith.constant 0 : i32
    %c0_i32_0 = arith.constant 0 : i32
    %c0_i32_1 = arith.constant 0 : i32
    return %c0_i32, %c0_i32_0 : i32, i32
  }
  func.func @transform_2(%arg0: i32, %arg1: i32, %arg2: i32) -> (i32, i32, i32) {
    %c0_i32 = arith.constant 0 : i32
    %c0_i32_0 = arith.constant 0 : i32
    %c0_i32_1 = arith.constant 0 : i32
    return %arg0, %c0_i32, %c0_i32_0 : i32, i32, i32
  }
  func.func @transform_3(%arg0: i32, %arg1: i32, %arg2: i32) -> (i32, i32, i32) {
    %c0_i32 = arith.constant 0 : i32
    %c0_i32_0 = arith.constant 0 : i32
    %c0_i32_1 = arith.constant 0 : i32
    return %arg0, %c0_i32, %c0_i32_0 : i32, i32, i32
  }
}

</mosaic_0001>

<bundles_post_ra>
// kernel: tpu_custom_call.1
= control target key start
LH: loop header
LB: loop body
LE: loop exit
PB: predicated region body
PF: predicated region fallthrough
CT: control target
= control target key end

     0   :  { %9 = vsyncpa [#allocation3], 0  ;;  %s968_s0 = inlined_call_operand.hbm [shape: f32[2,4,256], index: 0, kind: input, shape index: {}]   ;;  %s969_s1 = inlined_call_operand.vmem [shape: f32[4,1], index: 1, kind: input, shape index: {}]   ;;  %s970_s2 = inlined_call_operand.vmem [shape: f32[2,4,1], index: 2, kind: output, shape index: {0}]   ;;  %s971_s3 = inlined_call_operand.hbm [shape: f32[2,4,4], index: 3, kind: output, shape index: {1}]  }
   0x1   :  { %11 = vsyncpa [#allocation3 + $0x1], 0 }
   0x2   :  { %12 = vsyncpa [#allocation4], 0 }
   0x3   :  { %14 = vsyncpa [#allocation4 + $0x1], 0  ;;  %s763_s12 = smov 0   ;;  %s765_s13 = smov 0  }
   0x4   :  { %s767_s14 = smov 0   ;;  %s769_s15 = smov 0  }
   0x5   :  { %s771_s16 = smov 0   ;;  %s773_s17 = smov 0  }
   0x6   :  { %s775_s18 = smov 0   ;;  %s777_s19 = smov 0  }
   0x7   :  { %s779_s20 = smov 0   ;;  %s781_s21 = smov 0  }
   0x8   :  { %s783_s22 = smov 0  }
   0x9 LB: > { %s456_s23 = sadd.s32 4294967295, %s735_s22   ;;  %s457_s24 = sadd.s32 4294967294, %s735_s22   ;;  %s735_s22 = sphi %s783_s22, %s20_s22   ;;  %s731_s21 = sphi %s781_s21, %s995_s21   ;;  %s727_s20 = sphi %s779_s20, %s994_s20   ;;  %s723_s19 = sphi %s777_s19, %s993_s19   ;;  %s719_s18 = sphi %s775_s18, %s992_s18   ;;  %s715_s17 = sphi %s773_s17, %s991_s17   ;;  %s711_s16 = sphi %s771_s16, %s990_s16   ;;  %s707_s15 = sphi %s769_s15, %s989_s15   ;;  %s703_s14 = sphi %s767_s14, %s988_s14   ;;  %s699_s13 = sphi %s765_s13, %s987_s13   ;;  %s695_s12 = sphi %s763_s12, %s986_s12  }
   0xa   : > { %s35_s25 = sadd.s32 1, %s727_s20  ;;  %s39_s26 = sadd.s32 1, %s731_s21 }
   0xb   : > { %p37_p0 = scmp.ge.s32.totalorder %s35_s25, 2  ;;  %s50_s27 = sadd.s32 1, %s715_s17 }
   0xc   : > { %p57_p1 = scmp.ne.s32.totalorder %s715_s17, %s711_s16  ;;  %p58_p2 = scmp.eq.s32.totalorder %s735_s22, 0 }
   0xd   : > { %s997_s25 = smov (%p37_p0, %s35_s25), 0  ;;  %s999_s26 = smov (!%p37_p0, %s39_s26), %s731_s21 }
   0xe   : > { %974 = sst [smem:[#allocation8_spill]] %s997_s25  ;;  %s45_s28 = ssub.s32 %s727_s20, %s997_s25 }
   0xf   : > { %p829_p3 = por %p58_p2, %p57_p1  ;;  %p41_p4 = scmp.ge.s32.totalorder %s999_s26, 2 }
  0x10   : > { %p63_p5 = scmp.ne.s32.totalorder %s711_s16, %s707_s15  ;;  %p64_p6 = scmp.eq.s32.totalorder %s456_s23, 0 }
  0x11   : > { %s123_s30 = sadd.s32 1, %s703_s14  ;;  %s1001_s26 = smov (%p41_p4, %s999_s26), 0 }
  0x12   : > { %976 = sst [smem:[#allocation9_spill]] %s1001_s26  ;;  %p837_p7 = por %p64_p6, %p63_p5 }
  0x13   : > { %p133_p8 = scmp.ne.s32.totalorder %s703_s14, %s699_s13  ;;  %s46_s5 = ssub.s32 %s731_s21, %s1001_s26 }
  0x14   : > { %p134_p9 = scmp.eq.s32.totalorder %s456_s23, 3  ;;  %s47_s6 = sor.u32 %s46_s5, %s45_s28 }
  0x15   : > { %p121_p10 = scmp.eq.s32.totalorder %s46_s5, 0  ;;  %p48_p11 = scmp.eq.s32.totalorder %s47_s6, 0 }
  0x16   : > { %p845_p12 = por %p134_p9, %p133_p8  ;;  %p139_p13 = scmp.ne.s32.totalorder %s699_s13, %s695_s12 }
  0x17   : > { %s850_s8 = scalar_select %p121_p10, %s703_s14, %s123_s30  }
  0x18   : > { %s853_s9 = scalar_select %p48_p11, %s715_s17, %s50_s27  }
  0x19   : > { %p140_p0 = scmp.eq.s32.totalorder %s457_s24, 3  ;;  %p492_p1 = scmp.lt.s32.totalorder %s735_s22, 4 }
  0x1a   : > { %979 = sst [smem:[#allocation10_spill]] %s853_s9  ;;  %s163_s11 = sand.u32 1, %s715_s17  }
  0x1b   : > { %p858_p2 = por %p140_p0, %p139_p13  ;;  %s460_s15 = sshll.u32 %s163_s11, 2 }
  0x1c   : > { %s461_s23 = sshll.u32 %s727_s20, 1  ;;  %s167_s5 = scalar_lea.vmem [#allocation2], %s460_s15 }
  0x1d   : > { %s980_s10 = scalar_select %p858_p2, 1, 0 }
  0x1e   : > { %s173_s28 = sadd.s32 %s731_s21, %s461_s23  ;;  %s177_s6 = sshll.u32 %s167_s5, 4  ;;  %s178_s6 = int_to_ptr.vmem [resolvable:$true] %s177_s6 }
  0x1f   : > { %s462_s26 = sshll.u32 %s173_s28, 6  ;;  %p870_p4 = pnand %p492_p1, %p829_p3 }
  0x20   : > { %s175_s27 = scalar_lea.hbm %s968_s0, %s462_s26  ;;  %p463_p5 = scmp.ge.s32.totalorder %s735_s22, 1 }
  0x21   : > { %p182_p6 = scmp.lt.s32.totalorder %s735_s22, 5  ;;  %s164_s9 = scalar_lea.sflag [#allocation3], %s163_s11 }
  0x22   : > { %p589_p8 = pneg %p870_p4  ;;  %s600_s23 = scalar_lea.vmem %s178_s6, 64 }
  0x23   : > { %p601_p9 = scmp.ne.s32.totalorder %s178_s6, %s600_s23  ;;  %s737_s15 = smov [#allocation2]  }
  0x24   : > { %s605_s28 = sshll.u32 %s737_s15, 4  ;;  %s606_s28 = int_to_ptr.vmem [resolvable:$false] %s605_s28 }
  0x25   : > { %p603_p10 = pnand %p601_p9, %p589_p8  ;;  %s607_s25 = scalar_lea.vmem %s606_s28, 128 }
  0x26   : > { %p608_p13 = scmp.lt.s32.totalorder %s178_s6, %s606_s28  ;;  %p609_p0 = scmp.lt.s32.totalorder %s607_s25, %s600_s23 }
  0x27   : > { %p604_p11 = pneg %p603_p10 }
  0x28   : > { %p610_p3 = por %p609_p0, %p608_p13 }
  0x2a   : > { %p611_p1 = pnand %p610_p3, %p604_p11 }
  0x2c   : > { %614 = shalt.err (!%p611_p1)
}
  0x2d   : > { %487 = dma.hbm_to_vmem [thread:$0]  (!%p870_p4), %s175_s27, 64, %s178_s6, %s164_s9  }
  0x2e   : > { %p183_p2 = pnand %p463_p5, %p182_p6 }
  0x2f   : > { %s188_s26 = sand.u32 (!%p183_p2), 1, %s711_s16  }
  0x30   : > { %186 = sbr.rel (%p183_p2) target bundleno = 401 (0x191), region = 28  ;;  %s464_s29 = sshll.u32 (!%p183_p2), %s188_s26, 2 }
  0x31   : > { %s189_s11 = scalar_lea.sflag (!%p183_p2), [#allocation3], %s188_s26  ;;  %s192_s5 = scalar_lea.vmem (!%p183_p2), [#allocation2], %s464_s29 }
  0x35   : > { %686 = dma.done.wait (%p837_p7), %s189_s11, 64  }
  0x36   : > { %688 = vsyncadd (%p837_p7), %s189_s11, 4294967232  ;;  %s216_s9 = sand.u32 1, %s699_s13   ;;  %p220_p4 = scmp.lt.s32.totalorder %s723_s19, 1 }
  0x37   : > { %s465_s6 = sshll.u32 %s216_s9, 2  ;;  %p224_p2 = scmp.eq.s32.totalorder %s719_s18, 0 }
  0x38   : > { %s221_s30 = scalar_select %p220_p4, %s723_s19, 1  ;;  %vm230_vm0 = vcmask (%p224_p2), 3072   ;;  %vm232_vm1 = vcmask (%p224_p2), 27648   ;;  %v738_v0 = vmov (%p224_p2), 0.0  }
  0x39   : > { %s898_s28 = scalar_lea.vmem [#allocation5], %s465_s6  ;;  %229 = sbr.rel (!%p224_p2) target bundleno = 62 (0x3e), region = 36 }
  0x3a   : > { %s466_s27 = sshll.u32 %s221_s30, 2  ;;  %233 = vst.msk [vmem:[%s898_s28] sm:$0xf] (%p224_p2), %vm232_vm1, %v738_v0 }
  0x3b   : > { %s223_s15 = scalar_lea.vmem %s970_s2, %s466_s27 }
  0x3c   : > { %231 = vst.msk [vmem:[%s223_s15] sm:$0xf] (%p224_p2), %vm230_vm0, %v738_v0 }
  0x3e PF: > { %v235_v1 = vld [vmem:[%s969_s1] sm:$0xf]  ;;  %v739_v2 = vmov 0   ;;  %v740_v3 = vmov 0.0   ;;  %vm741_vm2 = vmmov 0   ;;  %vm243_vm3 = vcmask 1043456  }
  0x3f   : > { %586 = vset.pattern.permute.xlu0 %v739_v2  ;;  %475 = vmatprep.subr.mxu0 %v740_v3  ;;  %v234_v4 = vld [vmem:[%s192_s5] sm:$0xf]  ;;  %vm248_vm4 = vcmask 3072   ;;  %s469_s18 = sshll.u32 %s723_s19, 6  ;;  %s345_s26 = sshll.u32 %s898_s28, 4  ;;  %vm322_vm5 = vcmask 27648   ;;  %s346_s26 = int_to_ptr.vmem [resolvable:$true] %s345_s26 }
  0x40   : > { %238 = vperm.xlu0 %586, %v235_v1   ;;  %477 = vmatprep.mubr.msk.f32.mxu0 %vm741_vm2, %v740_v3  ;;  %s910_s5 = scalar_lea.hbm %s971_s3, %s469_s18  ;;  %s329_s6 = scalar_lea.sflag [#allocation4], %s216_s9 }
  0x41   : > { %v250_v11 = vld [vmem:[%s898_s28] sm:$0xf]  ;;  %s615_s30 = scalar_lea.vmem %s346_s26, 64  ;;  %s742_s19 = smov [#allocation5]  }
  0x42   : > { %p616_p7 = scmp.ne.s32.totalorder %s346_s26, %s615_s30  ;;  %s619_s27 = sshll.u32 %s742_s19, 4  ;;  %s620_s27 = int_to_ptr.vmem [resolvable:$false] %s619_s27 }
  0x43   : > { %v242_v8 = vld [vmem:[%s223_s15] sm:$0xf]  ;;  %s621_s24 = scalar_lea.vmem %s620_s27, 128  ;;  %p622_p8 = scmp.lt.s32.totalorder %s346_s26, %s620_s27 }
  0x44   : > { %p617_p5 = pnand %p616_p7, %p845_p12  ;;  %p623_p9 = scmp.lt.s32.totalorder %s621_s24, %s615_s30 }
  0x46   : > { %p618_p6 = pneg %p617_p5  ;;  %p624_p10 = por %p623_p9, %p622_p8 }
  0x48   : > { %p625_p11 = pnand %p624_p10, %p618_p6 }
  0xbb   : > { %v239_v5 = vpop.permute.xlu0 %238 }
  0xbc   : > { %v241_v6 = vsub.f32 %v234_v4, %v239_v5 }
  0xbe   : > { %476 = vmatpush3.xpose.msra.mxu0 %v241_v6  ;;  %v244_v7 = vsel %vm243_vm3, %v241_v6, 0.0 }
  0xbf   : > { %245 = vadd.xlane.f32.xlu0 %v244_v7 }
  0xc1   : > { %478 = vmatmul.mubr.f32.vlgmr.msra.gmra.mxu0 %v241_v6 }
 0x148   : > { %v246_v9 = vpop.xlane.xlu0 %245 }
 0x149   : > { %v247_v10 = vadd.f32 %v246_v9, %v242_v8 }
 0x14b   : > { %249 = vst.msk [vmem:[%s223_s15] sm:$0xf] %vm248_vm4, %v247_v10 }
 0x181   : > { %v317_v12 = vpop.f32.mrf.mxu0 }
 0x182   : > { %v321_v13 = vadd.f32 %v317_v12, %v250_v11 }
 0x183   : > { %v479_v14 = vpop.f32.mrf.mxu0 }
 0x184   : > { %323 = vst.msk [vmem:[%s898_s28] sm:$0xf] %vm322_vm5, %v321_v13 }
 0x185   : > { %628 = shalt.err (!%p625_p11)
}
 0x186   : > { %s629_s23 = scalar_lea.hbm %s910_s5, 64  ;;  %s633_s28 = scalar_lea.hbm %s971_s3, 128 }
 0x187   : > { %p630_p13 = scmp.ne.s32.totalorder %s910_s5, %s629_s23  ;;  %p634_p1 = scmp.lt.s32.totalorder %s910_s5, %s971_s3 }
 0x188   : > { %p635_p4 = scmp.lt.s32.totalorder %s633_s28, %s629_s23 }
 0x189   : > { %p631_p0 = pnand %p630_p13, %p845_p12 }
 0x18a   : > { %p636_p2 = por %p635_p4, %p634_p1 }
 0x18b   : > { %p632_p3 = pneg %p631_p0 }
 0x18d   : > { %p637_p7 = pnand %p636_p2, %p632_p3 }
 0x18f   : > { %640 = shalt.err (!%p637_p7)
}
 0x190   : > { %482 = dma.vmem_to_hbm [thread:$0]  (%p845_p12), %s346_s26, 64, %s910_s5, %s329_s6  }
 0x191 PF: > { %p493_p5 = scmp.ge.s32.totalorder %s735_s22, 2  ;;  %s364_s18 = sand.u32 1, %s695_s12  }
 0x192   : > { %p982_p6 = scmp.ne.s32.totalorder %s980_s10, 0  ;;  %s365_s29 = scalar_lea.sflag [#allocation4], %s364_s18 }
 0x194   : > { %p489_p8 = pnand %p493_p5, %p982_p6 }
 0x196   : > { %p490_p9 = pneg %p489_p8 }
 0x198   : > { %690 = dma.done.wait (%p490_p9), %s365_s29, 64  }
 0x199   : > { %692 = vsyncadd (%p490_p9), %s365_s29, 4294967232  ;;  %s20_s22 = sadd.s32 1, %s735_s22   ;;  %s983_s7 = sld [smem:[#allocation10_spill]] }
 0x19a   : > { %p17_p10 = scmp.ge.s32.totalorder %s20_s22, 6   ;;  %s984_s26 = sld [smem:[#allocation8_spill]] }
 0x19b   : > { %s985_s11 = sld [smem:[#allocation9_spill]]  ;;  %s986_s12 = smov %s699_s13 }
 0x19c   : > { %s987_s13 = smov %s703_s14  ;;  %s988_s14 = smov %s850_s8 }
 0x19d   : > { %s989_s15 = smov %s711_s16  ;;  %s990_s16 = smov %s715_s17 }
 0x19e   : > { %s992_s18 = smov %s727_s20  ;;  %s993_s19 = smov %s731_s21 }
 0x19f   : > { %s991_s17 = smov %s983_s7  ;;  %19 = sbr.rel (!%p17_p10) target bundleno = 9 (0x9), region = 89 }
 0x1a0   : > { %s994_s20 = smov %s984_s26 }
 0x1a1   : > { %s995_s21 = smov %s985_s11 }
 0x1a4   :  { %370 = vsyncpa [#allocation3], 1 }
 0x1a5   :  { %372 = vsyncpa [#allocation3 + $0x1], 1 }
 0x1a6   :  { %373 = vsyncpa [#allocation4], 1 }
 0x1a7   :  { %375 = vsyncpa [#allocation4 + $0x1], 1 }

</bundles_post_ra>
